<compile_context>
chip_gen: v7x
topology: tpu7x:2x2x1
jax: 0.10.0
libtpu: 0.0.40
codegen_flags: <defaults>
</compile_context>

<pallas_src>
import functools

import jax
import jax.numpy as jnp
from jax.experimental import pallas as pl
from jax.experimental.pallas import tpu as pltpu


def _round_up(n, m):
    return ((n + m - 1) // m) * m


def mlp_kernel(x_ref, w1_ref, b1_ref, w2_ref, b2_ref, o_ref):
    # fc1 on the MXU: bf16 inputs, f32 accumulation.
    h = jnp.dot(x_ref[...], w1_ref[...], preferred_element_type=jnp.float32)
    h = jnp.maximum(h + b1_ref[...], 0.0)            # bias + ReLU in f32 (VPU)
    # fc2 is tiny (50 -> 2); keep it in f32.
    y = jnp.dot(h, w2_ref[...], preferred_element_type=jnp.float32)
    o_ref[...] = (y + b2_ref[...]).astype(o_ref.dtype)


@functools.partial(jax.jit, static_argnames=("block_b",))
def net_forward(x, w1, b1, w2, b2, *, block_b=512):
    B, D_in = x.shape
    H = w1.shape[1]
    D_out = w2.shape[1]

    # Sublane-aligned batch tile, capped so double-buffered x tiles fit in
    # scoped VMEM on v5e/v6e/v7x at default limits.
    tb = min(block_b, _round_up(B, 8))
    padded_b = _round_up(B, tb)

    # bf16 for the dominant HBM traffic (x and the 2048x50 weight);
    # accumulation stays f32 inside the kernel.
    x_bf = x.astype(jnp.bfloat16)
    if padded_b != B:
        x_bf = jnp.pad(x_bf, ((0, padded_b - B), (0, 0)))
    w1_bf = w1.astype(jnp.bfloat16)

    grid = (padded_b // tb,)

    cost = pl.CostEstimate(
        flops=2 * padded_b * D_in * H + 2 * padded_b * H * D_out,
        transcendentals=0,
        bytes_accessed=(padded_b * D_in * 2          # x (bf16)
                        + D_in * H * 2               # w1 (bf16)
                        + H * D_out * 4              # w2 (f32)
                        + (H + D_out) * 4            # biases
                        + padded_b * D_out * 4),     # output (f32)
    )

    out = pl.pallas_call(
        mlp_kernel,
        out_shape=jax.ShapeDtypeStruct((padded_b, D_out), jnp.float32),
        grid=grid,
        in_specs=[
            pl.BlockSpec((tb, D_in), lambda i: (i, 0)),     # x: batch-tiled
            pl.BlockSpec((D_in, H), lambda i: (0, 0)),      # w1: resident
            pl.BlockSpec((1, H), lambda i: (0, 0)),         # b1: resident
            pl.BlockSpec((H, D_out), lambda i: (0, 0)),     # w2: resident
            pl.BlockSpec((1, D_out), lambda i: (0, 0)),     # b2: resident
        ],
        out_specs=pl.BlockSpec((tb, D_out), lambda i: (i, 0)),
        compiler_params=pltpu.CompilerParams(
            dimension_semantics=("parallel",),
        ),
        cost_estimate=cost,
    )(x_bf, w1_bf, b1, w2, b2)

    return out[:B] if padded_b != B else out


def init_params(key):
    # Deterministic init mirroring nn.Linear's default U(-1/sqrt(fan_in), 1/sqrt(fan_in)).
    k1, k2, k3, k4 = jax.random.split(key, 4)
    bound1 = 1.0 / jnp.sqrt(2048.0)
    bound2 = 1.0 / jnp.sqrt(50.0)
    w1 = jax.random.uniform(k1, (2048, 50), jnp.float32, -bound1, bound1)
    b1 = jax.random.uniform(k2, (1, 50), jnp.float32, -bound1, bound1)
    w2 = jax.random.uniform(k3, (50, 2), jnp.float32, -bound2, bound2)
    b2 = jax.random.uniform(k4, (1, 2), jnp.float32, -bound2, bound2)
    return w1, b1, w2, b2


if __name__ == "__main__":
    key = jax.random.PRNGKey(0)
    kx, kp = jax.random.split(key)

    batch = 2
    x = jax.random.normal(kx, (batch, 2048), jnp.float32)
    w1, b1, w2, b2 = init_params(kp)

    out = net_forward(x, w1, b1, w2, b2)
    jax.block_until_ready(out)

    # Reference in plain JAX, mirroring the kernel's precision
    # (bf16 inputs to fc1, f32 accumulation / epilogue).
    xb = x.astype(jnp.bfloat16).astype(jnp.float32)
    w1b = w1.astype(jnp.bfloat16).astype(jnp.float32)
    ref = jnp.maximum(xb @ w1b + b1, 0.0) @ w2 + b2

    assert out.shape == (batch, 2)
    assert jnp.allclose(out, ref, atol=1e-3, rtol=1e-3), (
        jnp.max(jnp.abs(out - ref)))

    # Also exercise a ragged, multi-tile batch to verify tail handling.
    big_b = 600
    xb_big = jax.random.normal(kx, (big_b, 2048), jnp.float32)
    out_big = net_forward(xb_big, w1, b1, w2, b2)
    jax.block_until_ready(out_big)
    xb32 = xb_big.astype(jnp.bfloat16).astype(jnp.float32)
    ref_big = jnp.maximum(xb32 @ w1b + b1, 0.0) @ w2 + b2
    assert out_big.shape == (big_b, 2)
    assert jnp.allclose(out_big, ref_big, atol=1e-3, rtol=1e-3)

    print("KERNEL_OK")
</pallas_src>

<mosaic_0001>
module attributes {stable_mosaic.version = 11 : i64} {
  func.func @mlp_kernel(%arg0: i32, %arg1: memref<8x2048xbf16, #tpu.memory_space<vmem>>, %arg2: memref<2048x50xbf16, #tpu.memory_space<vmem>>, %arg3: memref<1x50xf32, #tpu.memory_space<vmem>>, %arg4: memref<50x2xf32, #tpu.memory_space<vmem>>, %arg5: memref<1x2xf32, #tpu.memory_space<vmem>>, %arg6: memref<8x2xf32, #tpu.memory_space<vmem>>) attributes {dimension_semantics = [#tpu.dimension_semantics<parallel>], iteration_bounds = array<i64: 1>, scalar_prefetch = 0 : i64, scratch_operands = 0 : i64, tpu.core_type = #tpu.core_type<tc>, window_params = [{transform_indices = @transform_0, window_bounds = array<i64: 8, 2048>}, {pipeline_mode = #tpu.pipeline_mode<synchronous>, transform_indices = @transform_1, window_bounds = array<i64: 2048, 50>}, {pipeline_mode = #tpu.pipeline_mode<synchronous>, transform_indices = @transform_2, window_bounds = array<i64: 1, 50>}, {pipeline_mode = #tpu.pipeline_mode<synchronous>, transform_indices = @transform_3, window_bounds = array<i64: 50, 2>}, {pipeline_mode = #tpu.pipeline_mode<synchronous>, transform_indices = @transform_4, window_bounds = array<i64: 1, 2>}, {transform_indices = @transform_5, window_bounds = array<i64: 8, 2>}]} {
    %c0 = arith.constant 0 : index
    %c0_0 = arith.constant 0 : index
    %0 = vector.load %arg1[%c0, %c0_0] : memref<8x2048xbf16, #tpu.memory_space<vmem>>, vector<8x2048xbf16>
    %c0_1 = arith.constant 0 : index
    %c0_2 = arith.constant 0 : index
    %1 = vector.load %arg2[%c0_1, %c0_2] : memref<2048x50xbf16, #tpu.memory_space<vmem>>, vector<2048x50xbf16>
    %cst = arith.constant dense<0.000000e+00> : vector<8x50xf32>
    %2 = tpu.matmul %0, %1, %cst {dimension_numbers = #tpu.dot_dimension_numbers<[1], [0], [0], [1], [0, 0, 1, 1], [], []>} : vector<8x2048xbf16>, vector<2048x50xbf16>, vector<8x50xf32> -> vector<8x50xf32>
    %c0_3 = arith.constant 0 : index
    %c0_4 = arith.constant 0 : index
    %3 = vector.load %arg3[%c0_3, %c0_4] : memref<1x50xf32, #tpu.memory_space<vmem>>, vector<1x50xf32>
    %4 = vector.broadcast %3 : vector<1x50xf32> to vector<8x50xf32>
    %5 = arith.addf %2, %4 : vector<8x50xf32>
    %cst_5 = arith.constant 0.000000e+00 : f32
    %6 = vector.broadcast %cst_5 : f32 to vector<8x50xf32>
    %7 = arith.maximumf %5, %6 : vector<8x50xf32>
    %c0_6 = arith.constant 0 : index
    %c0_7 = arith.constant 0 : index
    %8 = vector.load %arg4[%c0_6, %c0_7] : memref<50x2xf32, #tpu.memory_space<vmem>>, vector<50x2xf32>
    %cst_8 = arith.constant dense<0.000000e+00> : vector<8x2xf32>
    %9 = tpu.matmul %7, %8, %cst_8 {dimension_numbers = #tpu.dot_dimension_numbers<[1], [0], [0], [1], [0, 0, 1, 1], [], []>} : vector<8x50xf32>, vector<50x2xf32>, vector<8x2xf32> -> vector<8x2xf32>
    %c0_9 = arith.constant 0 : index
    %c0_10 = arith.constant 0 : index
    %10 = vector.load %arg5[%c0_9, %c0_10] : memref<1x2xf32, #tpu.memory_space<vmem>>, vector<1x2xf32>
    %11 = vector.broadcast %10 : vector<1x2xf32> to vector<8x2xf32>
    %12 = arith.addf %9, %11 : vector<8x2xf32>
    %c0_11 = arith.constant 0 : index
    %c0_12 = arith.constant 0 : index
    %13 = vector.load %arg6[%c0_11, %c0_12] : memref<8x2xf32, #tpu.memory_space<vmem>>, vector<8x2xf32>
    tpu.vector_store %arg6[%c0_11, %c0_12], %12 {strides = array<i32>} : memref<8x2xf32, #tpu.memory_space<vmem>>, vector<8x2xf32>,
    return
  }
  func.func @transform_0(%arg0: i32) -> (i32, i32) {
    %c0_i32 = arith.constant 0 : i32
    %c0_i32_0 = arith.constant 0 : i32
    return %arg0, %c0_i32 : i32, i32
  }
  func.func @transform_1(%arg0: i32) -> (i32, i32) {
    %c0_i32 = arith.constant 0 : i32
    %c0_i32_0 = arith.constant 0 : i32
    %c0_i32_1 = arith.constant 0 : i32
    return %c0_i32, %c0_i32_0 : i32, i32
  }
  func.func @transform_2(%arg0: i32) -> (i32, i32) {
    %c0_i32 = arith.constant 0 : i32
    %c0_i32_0 = arith.constant 0 : i32
    %c0_i32_1 = arith.constant 0 : i32
    return %c0_i32, %c0_i32_0 : i32, i32
  }
  func.func @transform_3(%arg0: i32) -> (i32, i32) {
    %c0_i32 = arith.constant 0 : i32
    %c0_i32_0 = arith.constant 0 : i32
    %c0_i32_1 = arith.constant 0 : i32
    return %c0_i32, %c0_i32_0 : i32, i32
  }
  func.func @transform_4(%arg0: i32) -> (i32, i32) {
    %c0_i32 = arith.constant 0 : i32
    %c0_i32_0 = arith.constant 0 : i32
    %c0_i32_1 = arith.constant 0 : i32
    return %c0_i32, %c0_i32_0 : i32, i32
  }
  func.func @transform_5(%arg0: i32) -> (i32, i32) {
    %c0_i32 = arith.constant 0 : i32
    %c0_i32_0 = arith.constant 0 : i32
    return %arg0, %c0_i32 : i32, i32
  }
}

</mosaic_0001>

<bundles_post_ra>
// kernel: net_forward.1
= control target key start
LH: loop header
LB: loop body
LE: loop exit
PB: predicated region body
PF: predicated region fallthrough
CT: control target
= control target key end

     0   :  { %vm1455_vm0 = vcmask 1041408   ;;  %vm2042_vm1 = vmmov 0   ;;  %vm1451_vm2 = vcmask 408576   ;;  %vm1529_vm3 = vcmask 15360   ;;  %s2511_s1 = inlined_call_operand.vmem [shape: bf16[2048,50], index: 1, kind: input, shape index: {}]   ;;  %s2512_s0 = inlined_call_operand.vmem [shape: bf16[8,2048], index: 0, kind: input, shape index: {}]   ;;  %s2513_s3 = inlined_call_operand.vmem [shape: f32[50,2], index: 3, kind: input, shape index: {}]   ;;  %s2514_s2 = inlined_call_operand.vmem [shape: f32[1,50], index: 2, kind: input, shape index: {}]   ;;  %s2515_s4 = inlined_call_operand.vmem [shape: f32[1,2], index: 4, kind: input, shape index: {}]   ;;  %s2516_s5 = inlined_call_operand.vmem [shape: f32[8,2], index: 5, kind: output, shape index: {}]  }
   0x1   :  { %v1896_v0 = vld [vmem:[%s2511_s1 + $0x40] sm:$0xff]   ;;  %v1900_v4 = vld [vmem:[%s2511_s1 + $0x48] sm:$0xff]   ;;  %v1904_v8 = vld [vmem:[%s2511_s1 + $0x50] sm:$0xff]  }
   0x2   :  { %v1897_v1 = vld [vmem:[%s2511_s1 + $0xc0] sm:$0xff]   ;;  %1683 = vmatprep.subr.bf16.mxu0 %v1896_v0  ;;  %v1901_v5 = vld [vmem:[%s2511_s1 + $0xc8] sm:$0xff]   ;;  %v1905_v9 = vld [vmem:[%s2511_s1 + $0xd0] sm:$0xff]  }
   0x3   :  { %v1898_v2 = vld [vmem:[%s2511_s1] sm:$0xff]   ;;  %1705 = vmatprep.subr.bf16.mxu1 %v1897_v1  ;;  %v1902_v6 = vld [vmem:[%s2511_s1 + $0x8] sm:$0xff]   ;;  %v1906_v10 = vld [vmem:[%s2511_s1 + $0x10] sm:$0xff]  }
   0x4   :  { %v1899_v3 = vld [vmem:[%s2511_s1 + $0x80] sm:$0xff]   ;;  %1684 = vmatpush3.bf16.msra.mxu0 %v1898_v2  ;;  %v1903_v7 = vld [vmem:[%s2511_s1 + $0x88] sm:$0xff]   ;;  %v1907_v11 = vld [vmem:[%s2511_s1 + $0x90] sm:$0xff]  }
   0x5   :  { %1706 = vmatpush3.bf16.msra.mxu1 %v1899_v3  ;;  %1685 = vmatprep.subr.bf16.mxu0 %v1900_v4  ;;  %v1908_v12 = vld [vmem:[%s2511_s1 + $0x58] sm:$0xff]   ;;  %v1912_v16 = vld [vmem:[%s2511_s1 + $0x60] sm:$0xff]   ;;  %v1916_v20 = vld [vmem:[%s2511_s1 + $0x68] sm:$0xff]  }
   0x6   :  { %1707 = vmatprep.subr.bf16.mxu1 %v1901_v5  ;;  %v1909_v13 = vld [vmem:[%s2511_s1 + $0xd8] sm:$0xff]   ;;  %v1913_v17 = vld [vmem:[%s2511_s1 + $0xe0] sm:$0xff]   ;;  %v1917_v21 = vld [vmem:[%s2511_s1 + $0xe8] sm:$0xff]  }
   0x7   :  { %v1910_v14 = vld [vmem:[%s2511_s1 + $0x18] sm:$0xff]   ;;  %v1914_v18 = vld [vmem:[%s2511_s1 + $0x20] sm:$0xff]   ;;  %v1918_v22 = vld [vmem:[%s2511_s1 + $0x28] sm:$0xff]  }
   0x8   :  { %1686 = vmatpush3.bf16.msra.mxu0 %v1902_v6  ;;  %v1911_v15 = vld [vmem:[%s2511_s1 + $0x98] sm:$0xff]   ;;  %v1915_v19 = vld [vmem:[%s2511_s1 + $0xa0] sm:$0xff]   ;;  %v1919_v23 = vld [vmem:[%s2511_s1 + $0xa8] sm:$0xff]  }
   0x9   :  { %1708 = vmatpush3.bf16.msra.mxu1 %v1903_v7  ;;  %1687 = vmatprep.subr.bf16.mxu0 %v1904_v8  ;;  %v1920_v24 = vld [vmem:[%s2511_s1 + $0x70] sm:$0xff]   ;;  %v1924_v28 = vld [vmem:[%s2511_s1 + $0x78] sm:$0xff]   ;;  %v21_v32 = vld [vmem:[%s2512_s0] sm:$0xff] }
   0xa   :  { %1709 = vmatprep.subr.bf16.mxu1 %v1905_v9  ;;  %v1921_v25 = vld [vmem:[%s2511_s1 + $0xf0] sm:$0xff]   ;;  %v1925_v29 = vld [vmem:[%s2511_s1 + $0xf8] sm:$0xff]   ;;  %v22_v33 = vld [vmem:[%s2512_s0 + $0x8] sm:$0xff]  ;;  %v1536_v34 = vcombine.low %v21_v32, %v21_v32  ;;  %v1537_v35 = vcombine.high %v21_v32, %v21_v32 }
   0xb   :  { %v1922_v26 = vld [vmem:[%s2511_s1 + $0x30] sm:$0xff]   ;;  %v1926_v30 = vld [vmem:[%s2511_s1 + $0x38] sm:$0xff]   ;;  %v1538_v36 = vcombine.low %v22_v33, %v22_v33  ;;  %v1539_v37 = vcombine.high %v22_v33, %v22_v33  ;;  %v1932_v38 = vld [vmem:[%s2511_s1 + $0x140] sm:$0xff]  }
   0xc   :  { %1688 = vmatpush3.bf16.msra.mxu0 %v1906_v10  ;;  %v1923_v27 = vld [vmem:[%s2511_s1 + $0xb0] sm:$0xff]   ;;  %v1927_v31 = vld [vmem:[%s2511_s1 + $0xb8] sm:$0xff]   ;;  %v1933_v39 = vld [vmem:[%s2511_s1 + $0x1c0] sm:$0xff]   ;;  %1148 = vmatprep.mubr.bf16.mxu0 %v1537_v35 }
   0xd   :  { %1710 = vmatpush3.bf16.msra.mxu1 %v1907_v11  ;;  %1689 = vmatprep.subr.bf16.mxu0 %v1908_v12  ;;  %v1934_v40 = vld [vmem:[%s2511_s1 + $0x100] sm:$0xff]   ;;  %v1936_v42 = vld [vmem:[%s2511_s1 + $0x148] sm:$0xff]   ;;  %v1940_v46 = vld [vmem:[%s2511_s1 + $0x150] sm:$0xff]  }
   0xe   :  { %1711 = vmatprep.subr.bf16.mxu1 %v1909_v13  ;;  %1188 = vmatprep.mubr.bf16.mxu1 %v1539_v37  ;;  %v1935_v41 = vld [vmem:[%s2511_s1 + $0x180] sm:$0xff]   ;;  %v1937_v43 = vld [vmem:[%s2511_s1 + $0x1c8] sm:$0xff]   ;;  %v1941_v47 = vld [vmem:[%s2511_s1 + $0x1d0] sm:$0xff]  }
   0xf   :  { %v1938_v44 = vld [vmem:[%s2511_s1 + $0x108] sm:$0xff]   ;;  %v1942_v48 = vld [vmem:[%s2511_s1 + $0x110] sm:$0xff]   ;;  %v1944_v50 = vld [vmem:[%s2511_s1 + $0x158] sm:$0xff]  }
  0x10   :  { %1690 = vmatpush3.bf16.msra.mxu0 %v1910_v14  ;;  %v1939_v45 = vld [vmem:[%s2511_s1 + $0x188] sm:$0xff]   ;;  %v1943_v49 = vld [vmem:[%s2511_s1 + $0x190] sm:$0xff]   ;;  %v1945_v51 = vld [vmem:[%s2511_s1 + $0x1d8] sm:$0xff]  }
  0x11   :  { %1712 = vmatpush3.bf16.msra.mxu1 %v1911_v15  ;;  %1691 = vmatprep.subr.bf16.mxu0 %v1912_v16  ;;  %v1946_v52 = vld [vmem:[%s2511_s1 + $0x118] sm:$0xff]   ;;  %v1948_v54 = vld [vmem:[%s2511_s1 + $0x160] sm:$0xff]   ;;  %v1952_v58 = vld [vmem:[%s2511_s1 + $0x168] sm:$0xff]  }
  0x12   :  { %1713 = vmatprep.subr.bf16.mxu1 %v1913_v17  ;;  %v1947_v53 = vld [vmem:[%s2511_s1 + $0x198] sm:$0xff]   ;;  %v1949_v55 = vld [vmem:[%s2511_s1 + $0x1e0] sm:$0xff]   ;;  %v1953_v59 = vld [vmem:[%s2511_s1 + $0x1e8] sm:$0xff]  }
  0x13   :  { %v1950_v56 = vld [vmem:[%s2511_s1 + $0x120] sm:$0xff]   ;;  %v1954_v60 = vld [vmem:[%s2511_s1 + $0x128] sm:$0xff]   ;;  %v1956_v62 = vld [vmem:[%s2511_s1 + $0x170] sm:$0xff]  }
  0x14   :  { %1692 = vmatpush3.bf16.msra.mxu0 %v1914_v18  ;;  %v1951_v57 = vld [vmem:[%s2511_s1 + $0x1a0] sm:$0xff]   ;;  %v1955_v61 = vld [vmem:[%s2511_s1 + $0x1a8] sm:$0xff]   ;;  %v1957_v63 = vld [vmem:[%s2511_s1 + $0x1f0] sm:$0xff]  }
  0x15   :  { %1714 = vmatpush3.bf16.msra.mxu1 %v1915_v19  ;;  %1693 = vmatprep.subr.bf16.mxu0 %v1916_v20  ;;  %v1958_v0 = vld [vmem:[%s2511_s1 + $0x130] sm:$0xff]   ;;  %v1960_v2 = vld [vmem:[%s2511_s1 + $0x178] sm:$0xff]   ;;  %v1968_v12 = vld [vmem:[%s2511_s1 + $0x240] sm:$0xff]  }
  0x16   :  { %1715 = vmatprep.subr.bf16.mxu1 %v1917_v21  ;;  %v1959_v1 = vld [vmem:[%s2511_s1 + $0x1b0] sm:$0xff]   ;;  %v1961_v3 = vld [vmem:[%s2511_s1 + $0x1f8] sm:$0xff]   ;;  %v1969_v13 = vld [vmem:[%s2511_s1 + $0x2c0] sm:$0xff]  }
  0x17   :  { %v1962_v4 = vld [vmem:[%s2511_s1 + $0x138] sm:$0xff]   ;;  %v23_v6 = vld [vmem:[%s2512_s0 + $0x10] sm:$0xff]  ;;  %v1970_v14 = vld [vmem:[%s2511_s1 + $0x200] sm:$0xff]  }
  0x18   :  { %1694 = vmatpush3.bf16.msra.mxu0 %v1918_v22  ;;  %v1963_v5 = vld [vmem:[%s2511_s1 + $0x1b8] sm:$0xff]   ;;  %v1540_v7 = vcombine.low %v23_v6, %v23_v6  ;;  %v1541_v8 = vcombine.high %v23_v6, %v23_v6  ;;  %v1971_v15 = vld [vmem:[%s2511_s1 + $0x280] sm:$0xff]   ;;  %v1972_v16 = vld [vmem:[%s2511_s1 + $0x248] sm:$0xff]  }
  0x19   :  { %1716 = vmatpush3.bf16.msra.mxu1 %v1919_v23  ;;  %1695 = vmatprep.subr.bf16.mxu0 %v1920_v24  ;;  %v24_v9 = vld [vmem:[%s2512_s0 + $0x18] sm:$0xff]  ;;  %v1973_v17 = vld [vmem:[%s2511_s1 + $0x2c8] sm:$0xff]   ;;  %v1976_v20 = vld [vmem:[%s2511_s1 + $0x250] sm:$0xff]  }
  0x1a   :  { %1717 = vmatprep.subr.bf16.mxu1 %v1921_v25  ;;  %v1542_v10 = vcombine.low %v24_v9, %v24_v9  ;;  %v1543_v11 = vcombine.high %v24_v9, %v24_v9  ;;  %v1974_v18 = vld [vmem:[%s2511_s1 + $0x208] sm:$0xff]   ;;  %v1977_v21 = vld [vmem:[%s2511_s1 + $0x2d0] sm:$0xff]   ;;  %v1980_v24 = vld [vmem:[%s2511_s1 + $0x258] sm:$0xff]  }
  0x1b   :  { %v1975_v19 = vld [vmem:[%s2511_s1 + $0x288] sm:$0xff]   ;;  %v1978_v22 = vld [vmem:[%s2511_s1 + $0x210] sm:$0xff]   ;;  %v1981_v25 = vld [vmem:[%s2511_s1 + $0x2d8] sm:$0xff]  }
  0x1c   :  { %1696 = vmatpush3.bf16.msra.mxu0 %v1922_v26  ;;  %v1979_v23 = vld [vmem:[%s2511_s1 + $0x290] sm:$0xff]   ;;  %v1982_v26 = vld [vmem:[%s2511_s1 + $0x218] sm:$0xff]   ;;  %v1988_v32 = vld [vmem:[%s2511_s1 + $0x268] sm:$0xff]  }
  0x1d   :  { %1718 = vmatpush3.bf16.msra.mxu1 %v1923_v27  ;;  %1697 = vmatprep.subr.bf16.mxu0 %v1924_v28  ;;  %v1983_v27 = vld [vmem:[%s2511_s1 + $0x298] sm:$0xff]   ;;  %v1984_v28 = vld [vmem:[%s2511_s1 + $0x260] sm:$0xff]   ;;  %v1989_v33 = vld [vmem:[%s2511_s1 + $0x2e8] sm:$0xff]  }
  0x1e   :  { %1719 = vmatprep.subr.bf16.mxu1 %v1925_v29  ;;  %v1985_v29 = vld [vmem:[%s2511_s1 + $0x2e0] sm:$0xff]   ;;  %v1991_v35 = vld [vmem:[%s2511_s1 + $0x2a8] sm:$0xff]   ;;  %v1993_v37 = vld [vmem:[%s2511_s1 + $0x2f0] sm:$0xff]  }
  0x1f   :  { %v2024_v6 = vld [vmem:[%s2511_s1 + $0x368] sm:$0xff]  }
  0x20   :  { %1698 = vmatpush3.bf16.msra.mxu0 %v1926_v30  ;;  %v1986_v30 = vld [vmem:[%s2511_s1 + $0x220] sm:$0xff]   ;;  %v2027_v9 = vld [vmem:[%s2511_s1 + $0x3a8] sm:$0xff]  }
  0x21   :  { %1720 = vmatpush3.bf16.msra.mxu1 %v1927_v31  ;;  %1727 = vmatprep.subr.bf16.mxu0 %v1932_v38  ;;  %v1987_v31 = vld [vmem:[%s2511_s1 + $0x2a0] sm:$0xff]   ;;  %v1994_v38 = vld [vmem:[%s2511_s1 + $0x230] sm:$0xff]  }
  0x22   :  { %1749 = vmatprep.subr.bf16.mxu1 %v1933_v39  ;;  %v1995_v39 = vld [vmem:[%s2511_s1 + $0x2b0] sm:$0xff]  }
  0x23   :  { %1149 = vmatmul.mubr.bf16.vlgmr.msra.gmra.mrb[0].mxu0 %v1536_v34  ;;  %v1990_v34 = vld [vmem:[%s2511_s1 + $0x228] sm:$0xff]  }
  0x24   :  { %1189 = vmatmul.mubr.bf16.vlgmr.msra.gmra.mrb[0].mxu1 %v1538_v36  ;;  %1728 = vmatpush3.bf16.msra.mxu0 %v1934_v40  ;;  %v1992_v36 = vld [vmem:[%s2511_s1 + $0x270] sm:$0xff]   ;;  %v1996_v40 = vld [vmem:[%s2511_s1 + $0x278] sm:$0xff]  }
  0x25   :  { %1750 = vmatpush3.bf16.msra.mxu1 %v1935_v41  ;;  %1729 = vmatprep.subr.bf16.mxu0 %v1936_v42  ;;  %v1997_v41 = vld [vmem:[%s2511_s1 + $0x2f8] sm:$0xff]  }
  0x26   :  { %1751 = vmatprep.subr.bf16.mxu1 %v1937_v43  ;;  %1228 = vmatprep.mubr.bf16.mxu0 %v1541_v8  ;;  %v1998_v42 = vld [vmem:[%s2511_s1 + $0x238] sm:$0xff]   ;;  %v2026_v8 = vld [vmem:[%s2511_s1 + $0x328] sm:$0xff]  }
  0x27   :  { %1268 = vmatprep.mubr.bf16.mxu1 %v1543_v11  ;;  %v1999_v43 = vld [vmem:[%s2511_s1 + $0x2b8] sm:$0xff]   ;;  %v2029_v11 = vld [vmem:[%s2511_s1 + $0x3f0] sm:$0xff]  }
  0x28   :  { %1730 = vmatpush3.bf16.msra.mxu0 %v1938_v44  ;;  %v25_v44 = vld [vmem:[%s2512_s0 + $0x20] sm:$0xff] }
  0x29   :  { %1752 = vmatpush3.bf16.msra.mxu1 %v1939_v45  ;;  %1731 = vmatprep.subr.bf16.mxu0 %v1940_v46  ;;  %v26_v45 = vld [vmem:[%s2512_s0 + $0x28] sm:$0xff]  ;;  %v1544_v46 = vcombine.low %v25_v44, %v25_v44 }
  0x2a   :  { %1753 = vmatprep.subr.bf16.mxu1 %v1941_v47  ;;  %v1545_v47 = vcombine.high %v25_v44, %v25_v44 }
  0x2c   :  { %1732 = vmatpush3.bf16.msra.mxu0 %v1942_v48  ;;  %v1546_v48 = vcombine.low %v26_v45, %v26_v45 }
  0x2d   :  { %1754 = vmatpush3.bf16.msra.mxu1 %v1943_v49  ;;  %1733 = vmatprep.subr.bf16.mxu0 %v1944_v50  ;;  %v1547_v49 = vcombine.high %v26_v45, %v26_v45  ;;  %v2004_v50 = vld [vmem:[%s2511_s1 + $0x340] sm:$0xff]  }
  0x2e   :  { %1755 = vmatprep.subr.bf16.mxu1 %v1945_v51  ;;  %v2005_v51 = vld [vmem:[%s2511_s1 + $0x3c0] sm:$0xff]  }
  0x30   :  { %1734 = vmatpush3.bf16.msra.mxu0 %v1946_v52  ;;  %v2006_v52 = vld [vmem:[%s2511_s1 + $0x300] sm:$0xff]  }
  0x31   :  { %1756 = vmatpush3.bf16.msra.mxu1 %v1947_v53  ;;  %1735 = vmatprep.subr.bf16.mxu0 %v1948_v54  ;;  %v2007_v53 = vld [vmem:[%s2511_s1 + $0x380] sm:$0xff]   ;;  %v2008_v54 = vld [vmem:[%s2511_s1 + $0x348] sm:$0xff]  }
  0x32   :  { %1757 = vmatprep.subr.bf16.mxu1 %v1949_v55  ;;  %v2009_v55 = vld [vmem:[%s2511_s1 + $0x3c8] sm:$0xff]  }
  0x34   :  { %1736 = vmatpush3.bf16.msra.mxu0 %v1950_v56  ;;  %v2010_v56 = vld [vmem:[%s2511_s1 + $0x308] sm:$0xff]  }
  0x35   :  { %1758 = vmatpush3.bf16.msra.mxu1 %v1951_v57  ;;  %1737 = vmatprep.subr.bf16.mxu0 %v1952_v58  ;;  %v2011_v57 = vld [vmem:[%s2511_s1 + $0x388] sm:$0xff]   ;;  %v2012_v58 = vld [vmem:[%s2511_s1 + $0x350] sm:$0xff]  }
  0x36   :  { %1759 = vmatprep.subr.bf16.mxu1 %v1953_v59  ;;  %v2013_v59 = vld [vmem:[%s2511_s1 + $0x3d0] sm:$0xff]  }
  0x38   :  { %1738 = vmatpush3.bf16.msra.mxu0 %v1954_v60  ;;  %v2014_v60 = vld [vmem:[%s2511_s1 + $0x310] sm:$0xff]  }
  0x39   :  { %1760 = vmatpush3.bf16.msra.mxu1 %v1955_v61  ;;  %1739 = vmatprep.subr.bf16.mxu0 %v1956_v62  ;;  %v2015_v61 = vld [vmem:[%s2511_s1 + $0x390] sm:$0xff]   ;;  %v2016_v62 = vld [vmem:[%s2511_s1 + $0x358] sm:$0xff]  }
  0x3a   :  { %1761 = vmatprep.subr.bf16.mxu1 %v1957_v63  ;;  %v2017_v63 = vld [vmem:[%s2511_s1 + $0x3d8] sm:$0xff]  }
  0x3c   :  { %1740 = vmatpush3.bf16.msra.mxu0 %v1958_v0  ;;  %v2018_v0 = vld [vmem:[%s2511_s1 + $0x318] sm:$0xff]  }
  0x3d   :  { %1762 = vmatpush3.bf16.msra.mxu1 %v1959_v1  ;;  %1741 = vmatprep.subr.bf16.mxu0 %v1960_v2  ;;  %v2019_v1 = vld [vmem:[%s2511_s1 + $0x398] sm:$0xff]   ;;  %v2020_v2 = vld [vmem:[%s2511_s1 + $0x360] sm:$0xff]  }
  0x3e   :  { %1763 = vmatprep.subr.bf16.mxu1 %v1961_v3  ;;  %v2021_v3 = vld [vmem:[%s2511_s1 + $0x3e0] sm:$0xff]  }
  0x40   :  { %1742 = vmatpush3.bf16.msra.mxu0 %v1962_v4  ;;  %v2022_v4 = vld [vmem:[%s2511_s1 + $0x320] sm:$0xff]  }
  0x41   :  { %1764 = vmatpush3.bf16.msra.mxu1 %v1963_v5  ;;  %1771 = vmatprep.subr.bf16.mxu0 %v1968_v12  ;;  %v2023_v5 = vld [vmem:[%s2511_s1 + $0x3a0] sm:$0xff]   ;;  %v2030_v12 = vld [vmem:[%s2511_s1 + $0x330] sm:$0xff]  }
  0x42   :  { %1793 = vmatprep.subr.bf16.mxu1 %v1969_v13  ;;  %v2031_v13 = vld [vmem:[%s2511_s1 + $0x3b0] sm:$0xff]  }
  0x43   :  { %1229 = vmatmul.mubr.bf16.vlgmr.msra.gmra.mrb[4].mxu0 %v1540_v7  ;;  %v2025_v7 = vld [vmem:[%s2511_s1 + $0x3e8] sm:$0xff]  }
  0x44   :  { %1269 = vmatmul.mubr.bf16.vlgmr.msra.gmra.mrb[4].mxu1 %v1542_v10  ;;  %1772 = vmatpush3.bf16.msra.mxu0 %v1970_v14  ;;  %v2028_v10 = vld [vmem:[%s2511_s1 + $0x370] sm:$0xff]   ;;  %v2032_v14 = vld [vmem:[%s2511_s1 + $0x378] sm:$0xff]  }
  0x45   :  { %1794 = vmatpush3.bf16.msra.mxu1 %v1971_v15  ;;  %1773 = vmatprep.subr.bf16.mxu0 %v1972_v16  ;;  %v2033_v15 = vld [vmem:[%s2511_s1 + $0x3f8] sm:$0xff]  }
  0x46   :  { %1795 = vmatprep.subr.bf16.mxu1 %v1973_v17  ;;  %1308 = vmatprep.mubr.bf16.mxu0 %v1545_v47  ;;  %v2034_v16 = vld [vmem:[%s2511_s1 + $0x338] sm:$0xff]  }
  0x47   :  { %1348 = vmatprep.mubr.bf16.mxu1 %v1547_v49  ;;  %v2035_v17 = vld [vmem:[%s2511_s1 + $0x3b8] sm:$0xff]  }
  0x48   :  { %1774 = vmatpush3.bf16.msra.mxu0 %v1974_v18  ;;  %v27_v18 = vld [vmem:[%s2512_s0 + $0x30] sm:$0xff] }
  0x49   :  { %1796 = vmatpush3.bf16.msra.mxu1 %v1975_v19  ;;  %1775 = vmatprep.subr.bf16.mxu0 %v1976_v20  ;;  %v28_v19 = vld [vmem:[%s2512_s0 + $0x38] sm:$0xff]  ;;  %v1548_v20 = vcombine.low %v27_v18, %v27_v18 }
  0x4a   :  { %1797 = vmatprep.subr.bf16.mxu1 %v1977_v21  ;;  %v1549_v21 = vcombine.high %v27_v18, %v27_v18 }
  0x4c   :  { %1776 = vmatpush3.bf16.msra.mxu0 %v1978_v22  ;;  %v1550_v22 = vcombine.low %v28_v19, %v28_v19 }
  0x4d   :  { %1798 = vmatpush3.bf16.msra.mxu1 %v1979_v23  ;;  %1777 = vmatprep.subr.bf16.mxu0 %v1980_v24  ;;  %v1551_v23 = vcombine.high %v28_v19, %v28_v19  ;;  %v2040_v24 = vmov 0.0|0.0  }
  0x4e   :  { %1799 = vmatprep.subr.bf16.mxu1 %v1981_v25  ;;  %v1437_v25 = vld [vmem:[%s2513_s3] sm:$0xff] }
  0x50   :  { %1778 = vmatpush3.bf16.msra.mxu0 %v1982_v26  ;;  %v1438_v26 = vld [vmem:[%s2513_s3 + $0x8] sm:$0xff] }
  0x51   :  { %1800 = vmatpush3.bf16.msra.mxu1 %v1983_v27  ;;  %1779 = vmatprep.subr.bf16.mxu0 %v1984_v28  ;;  %v1885_v27 = vpack.c.bf16 %v1438_v26, %v1437_v25  ;;  %v1439_v28 = vld [vmem:[%s2513_s3 + $0x10] sm:$0xff] }
  0x52   :  { %1801 = vmatprep.subr.bf16.mxu1 %v1985_v29  ;;  %v1440_v29 = vld [vmem:[%s2513_s3 + $0x18] sm:$0xff] }
  0x54   :  { %1780 = vmatpush3.bf16.msra.mxu0 %v1986_v30  ;;  %v1888_v30 = vpack.c.bf16 %v1440_v29, %v1439_v28 }
  0x55   :  { %1802 = vmatpush3.bf16.msra.mxu1 %v1987_v31  ;;  %1781 = vmatprep.subr.bf16.mxu0 %v1988_v32  ;;  %v1441_v31 = vld [vmem:[%s2513_s3 + $0x20] sm:$0xff]  ;;  %v1442_v32 = vld [vmem:[%s2513_s3 + $0x28] sm:$0xff] }
  0x56   :  { %1803 = vmatprep.subr.bf16.mxu1 %v1989_v33  ;;  %v1891_v33 = vpack.c.bf16 %v1442_v32, %v1441_v31 }
  0x58   :  { %1782 = vmatpush3.bf16.msra.mxu0 %v1990_v34  ;;  %v1443_v34 = vld [vmem:[%s2513_s3 + $0x30] sm:$0x3] }
  0x59   :  { %1804 = vmatpush3.bf16.msra.mxu1 %v1991_v35  ;;  %1783 = vmatprep.subr.bf16.mxu0 %v1992_v36  ;;  %v2041_v35 = vmov 0.0  }
  0x5a   :  { %1805 = vmatprep.subr.bf16.mxu1 %v1993_v37 }
  0x5c   :  { %1784 = vmatpush3.bf16.msra.mxu0 %v1994_v38  ;;  %v1535_v38 = vld [vmem:[%s2514_s2] ss:$0 sm:$0xff] }
  0x5d   :  { %1806 = vmatpush3.bf16.msra.mxu1 %v1995_v39  ;;  %1785 = vmatprep.subr.bf16.mxu0 %v1996_v40 }
  0x5e   :  { %1807 = vmatprep.subr.bf16.mxu1 %v1997_v41 }
  0x60   :  { %1786 = vmatpush3.bf16.msra.mxu0 %v1998_v42 }
  0x61   :  { %1808 = vmatpush3.bf16.msra.mxu1 %v1999_v43  ;;  %1815 = vmatprep.subr.bf16.mxu0 %v2004_v50 }
  0x62   :  { %1837 = vmatprep.subr.bf16.mxu1 %v2005_v51 }
  0x63   :  { %1309 = vmatmul.mubr.bf16.vlgmr.msra.gmra.mrb[8].mxu0 %v1544_v46 }
  0x64   :  { %1349 = vmatmul.mubr.bf16.vlgmr.msra.gmra.mrb[8].mxu1 %v1546_v48  ;;  %1816 = vmatpush3.bf16.msra.mxu0 %v2006_v52 }
  0x65   :  { %1838 = vmatpush3.bf16.msra.mxu1 %v2007_v53  ;;  %1817 = vmatprep.subr.bf16.mxu0 %v2008_v54 }
  0x66   :  { %1839 = vmatprep.subr.bf16.mxu1 %v2009_v55  ;;  %1388 = vmatprep.mubr.bf16.mxu0 %v1549_v21 }
  0x67   :  { %1428 = vmatprep.mubr.bf16.mxu1 %v1551_v23 }
  0x68   :  { %1818 = vmatpush3.bf16.msra.mxu0 %v2010_v56 }
  0x69   :  { %1840 = vmatpush3.bf16.msra.mxu1 %v2011_v57  ;;  %1819 = vmatprep.subr.bf16.mxu0 %v2012_v58 }
  0x6a   :  { %1841 = vmatprep.subr.bf16.mxu1 %v2013_v59 }
  0x6c   :  { %1820 = vmatpush3.bf16.msra.mxu0 %v2014_v60 }
  0x6d   :  { %1842 = vmatpush3.bf16.msra.mxu1 %v2015_v61  ;;  %1821 = vmatprep.subr.bf16.mxu0 %v2016_v62 }
  0x6e   :  { %1843 = vmatprep.subr.bf16.mxu1 %v2017_v63 }
  0x70   :  { %1822 = vmatpush3.bf16.msra.mxu0 %v2018_v0 }
  0x71   :  { %1844 = vmatpush3.bf16.msra.mxu1 %v2019_v1  ;;  %1823 = vmatprep.subr.bf16.mxu0 %v2020_v2 }
  0x72   :  { %1845 = vmatprep.subr.bf16.mxu1 %v2021_v3 }
  0x74   :  { %1824 = vmatpush3.bf16.msra.mxu0 %v2022_v4 }
  0x75   :  { %1846 = vmatpush3.bf16.msra.mxu1 %v2023_v5  ;;  %1825 = vmatprep.subr.bf16.mxu0 %v2024_v6 }
  0x76   :  { %1847 = vmatprep.subr.bf16.mxu1 %v2025_v7 }
  0x78   :  { %1826 = vmatpush3.bf16.msra.mxu0 %v2026_v8 }
  0x79   :  { %1848 = vmatpush3.bf16.msra.mxu1 %v2027_v9  ;;  %1827 = vmatprep.subr.bf16.mxu0 %v2028_v10 }
  0x7a   :  { %1849 = vmatprep.subr.bf16.mxu1 %v2029_v11 }
  0x7c   :  { %1828 = vmatpush3.bf16.msra.mxu0 %v2030_v12 }
  0x7d   :  { %1850 = vmatpush3.bf16.msra.mxu1 %v2031_v13  ;;  %1829 = vmatprep.subr.bf16.mxu0 %v2032_v14 }
  0x7e   :  { %1851 = vmatprep.subr.bf16.mxu1 %v2033_v15 }
  0x80   :  { %1830 = vmatpush3.bf16.msra.mxu0 %v2034_v16 }
  0x81   :  { %1852 = vmatpush3.bf16.msra.mxu1 %v2035_v17  ;;  %1884 = vmatprep.subr.bf16.mxu0 %v2040_v24 }
  0x83   :  { %1389 = vmatmul.mubr.bf16.vlgmr.msra.gmra.mrb[12].mxu0 %v1548_v20 }
  0x84   :  { %1429 = vmatmul.mubr.bf16.vlgmr.msra.gmra.mrb[12].mxu1 %v1550_v22  ;;  %1886 = vmatpush3.bf16.msra.mxu0 %v1885_v27  ;;  %v1680_v22 = vld [vmem:[%s2515_s4] ss:$0 sm:$0xff] }
  0x85   :  { %1887 = vmatprep.subr.bf16.mxu0 %v2040_v24  ;;  %1881 = vmatprep.mubr.msk.f32.mxu0 %vm2042_vm1, %v2041_v35 }
  0x88   :  { %1889 = vmatpush3.bf16.msra.mxu0 %v1888_v30 }
  0x89   :  { %1890 = vmatprep.subr.bf16.mxu0 %v2040_v24 }
  0x8c   :  { %1892 = vmatpush3.bf16.msra.mxu0 %v1891_v33 }
  0x8d   :  { %1879 = vmatprep.subr.mxu0 %v2041_v35 }
  0x90   :  { %1880 = vmatpush3.msk.msra.mxu0 %vm1455_vm0, %v1443_v34 }
  0xf6   :  { %v1699_v36 = vpop.f32.mrb[0].mxu0 }
  0xf7   :  { %v1721_v37 = vpop.f32.mrb[0].mxu1  ;;  %v1700_v39 = vpop.f32.mrb[1].mxu0 }
  0xf8   :  { %v1722_v40 = vpop.f32.mrb[1].mxu1  ;;  %v1701_v41 = vadd.f32 %v1700_v39, %v1699_v36  ;;  %v1702_v43 = vpop.f32.mrb[2].mxu0 }
  0xf9   :  { %v1723_v42 = vadd.f32 %v1722_v40, %v1721_v37  ;;  %v1724_v44 = vpop.f32.mrb[2].mxu1  ;;  %v1703_v45 = vpop.f32.mrb[3].mxu0 }
  0xfa   :  { %v1725_v46 = vpop.f32.mrb[3].mxu1  ;;  %v1151_v47 = vadd.f32 %v1701_v41, %v1535_v38 }
  0xfc   :  { %v1191_v48 = vadd.f32 %v1723_v42, %v1151_v47 }
 0x116   :  { %v1743_v49 = vpop.f32.mrb[4].mxu0 }
 0x117   :  { %v1765_v50 = vpop.f32.mrb[4].mxu1  ;;  %v1744_v51 = vpop.f32.mrb[5].mxu0 }
 0x118   :  { %v1766_v52 = vpop.f32.mrb[5].mxu1  ;;  %v1745_v53 = vadd.f32 %v1744_v51, %v1743_v49  ;;  %v1746_v55 = vpop.f32.mrb[6].mxu0 }
 0x119   :  { %v1767_v54 = vadd.f32 %v1766_v52, %v1765_v50  ;;  %v1768_v56 = vpop.f32.mrb[6].mxu1  ;;  %v1747_v57 = vpop.f32.mrb[7].mxu0 }
 0x11a   :  { %v1769_v58 = vpop.f32.mrb[7].mxu1  ;;  %v1231_v59 = vadd.f32 %v1745_v53, %v1191_v48 }
 0x11c   :  { %v1271_v60 = vadd.f32 %v1767_v54, %v1231_v59 }
 0x136   :  { %v1787_v61 = vpop.f32.mrb[8].mxu0 }
 0x137   :  { %v1809_v62 = vpop.f32.mrb[8].mxu1  ;;  %v1788_v63 = vpop.f32.mrb[9].mxu0 }
 0x138   :  { %v1789_v0 = vadd.f32 %v1788_v63, %v1787_v61  ;;  %v1810_v1 = vpop.f32.mrb[9].mxu1  ;;  %v1790_v2 = vpop.f32.mrb[10].mxu0 }
 0x139   :  { %v1811_v3 = vadd.f32 %v1810_v1, %v1809_v62  ;;  %v1812_v4 = vpop.f32.mrb[10].mxu1  ;;  %v1791_v5 = vpop.f32.mrb[11].mxu0 }
 0x13a   :  { %v1311_v6 = vadd.f32 %v1789_v0, %v1271_v60  ;;  %v1813_v7 = vpop.f32.mrb[11].mxu1 }
 0x13c   :  { %v1351_v8 = vadd.f32 %v1811_v3, %v1311_v6 }
 0x156   :  { %v1831_v9 = vpop.f32.mrb[12].mxu0 }
 0x157   :  { %v1853_v10 = vpop.f32.mrb[12].mxu1  ;;  %v1832_v11 = vpop.f32.mrb[13].mxu0 }
 0x158   :  { %v1833_v12 = vadd.f32 %v1832_v11, %v1831_v9  ;;  %v1854_v13 = vpop.f32.mrb[13].mxu1  ;;  %v1834_v14 = vpop.f32.mrb[14].mxu0 }
 0x159   :  { %v1855_v15 = vadd.f32 %v1854_v13, %v1853_v10  ;;  %v1856_v16 = vpop.f32.mrb[14].mxu1  ;;  %v1835_v17 = vpop.f32.mrb[15].mxu0 }
 0x15a   :  { %v1391_v18 = vadd.f32 %v1833_v12, %v1351_v8  ;;  %v1857_v19 = vpop.f32.mrb[15].mxu1 }
 0x15c   :  { %v1431_v20 = vadd.f32 %v1855_v15, %v1391_v18 }
 0x15e   :  { %v1436_v21 = vmax.f32 %v1431_v20, 0.0 }
 0x160   :  { %1882 = vmatmul.mubr.msk.f32.vlgmr.msra.gmra.mrb[16].mxu0 %vm1451_vm2, %v1436_v21 }
 0x233   :  { %v1525_v23 = vpop.f32.mrb[16].mxu0 }
 0x234   :  { %v1526_v24 = vadd.f32 %v1680_v22, %v1525_v23  ;;  %v1883_v25 = vpop.f32.mrb[17].mxu0 }
 0x236   :  { %1530 = vst.msk [vmem:[%s2516_s5] sm:$0xff] %vm1529_vm3, %v1526_v24 }

</bundles_post_ra>
